<compile_context>
chip_gen: v7x
topology: tpu7x:2x2x1
jax: 0.10.0
libtpu: 0.0.40
codegen_flags: <defaults>
</compile_context>

<pallas_src>
import functools
import math

import numpy as np
import jax
import jax.numpy as jnp
from jax import lax
from jax.experimental import pallas as pl
from jax.experimental.pallas import tpu as pltpu

F32 = jnp.float32

BATCH   = 2
SEQ_LEN = 8
D_MODEL = 128     # lane-dense on TPU
MAX_LEN = 50      # module attribute; unused by the forward math
DROPOUT = 0.0     # eval / p=0 -> identity

_NEG_LOG_10000 = -math.log(10000.0)
_HALF_PI = math.pi / 2.0


# ------------------------------ Pallas kernel ------------------------------
def _pe_kernel(x_ref, t_ref, o_ref):
    # x_ref: [TM, D]   t_ref: [TM, 1]   o_ref: [TM, D]
    d = x_ref.shape[-1]
    # Rebuild div_term / phase in-register (no constant-input DMA):
    #   lane j -> div[j] = exp(2*(j//2) * (-ln(10000)/d)),  phase[j] = (j%2)*pi/2
    j = lax.broadcasted_iota(jnp.int32, (1, d), 1)                 # lane index
    div = jnp.exp((2 * (j >> 1)).astype(F32) * (_NEG_LOG_10000 / d))
    phase = (j & 1).astype(F32) * _HALF_PI                         # 0 even, pi/2 odd
    pe = jnp.sin(t_ref[...].astype(F32) * div + phase)             # cos == sin(a+pi/2)
    o_ref[...] = (x_ref[...].astype(F32) + pe).astype(o_ref.dtype)


@functools.partial(jax.jit, static_argnames=("block_rows",))
def positional_encoding_forward(x, t, *, block_rows=1024):
    """x: [B, S, d_model], t: [B, S]  ->  x + PE(t)  (eval-mode dropout)."""
    B, S, D = x.shape
    N = B * S
    x2 = x.reshape(N, D)
    t2 = t.reshape(N, 1)

    # Row tile: full block for small N, else 1024-row tiles (512 KiB f32 per
    # x tile; double-buffered streams stay far under v5e's 16 MiB scoped VMEM
    # and v7x's 64 MiB physical VMEM).
    tm = N if N <= block_rows else block_rows
    grid = (pl.cdiv(N, tm),)

    out = pl.pallas_call(
        _pe_kernel,
        grid=grid,
        in_specs=[
            pl.BlockSpec((tm, D), lambda i: (i, 0)),
            pl.BlockSpec((tm, 1), lambda i: (i, 0)),
        ],
        out_specs=pl.BlockSpec((tm, D), lambda i: (i, 0)),
        out_shape=jax.ShapeDtypeStruct((N, D), x.dtype),
        input_output_aliases={0: 0},   # output reuses x's buffer when legal
        compiler_params=pltpu.CompilerParams(
            dimension_semantics=("parallel",)),
    )(x2, t2)
    return out.reshape(B, S, D)


# ------------------------------- reference ---------------------------------
def reference_forward(x, t):
    """Pure-JAX transcription of the PyTorch module (eval mode)."""
    B, S, D = x.shape
    half = jnp.exp(jnp.arange(0, D, 2, dtype=F32) * (-math.log(10000.0) / D))
    tt = t[..., None].astype(F32)                                   # [B, S, 1]
    pe = jnp.stack([jnp.sin(tt * half), jnp.cos(tt * half)], axis=-1)
    pe = pe.reshape(B, S, D)                       # [..., 0::2]=sin, 1::2=cos
    return x.astype(F32) + pe


# ---------------------------------- main ------------------------------------
if __name__ == "__main__":
    key = jax.random.PRNGKey(0)
    kx, kt = jax.random.split(key)
    x = jax.random.normal(kx, (BATCH, SEQ_LEN, D_MODEL), F32)
    # t: cumulative event times (what DeepSTPP's encoder feeds this module)
    dt = jax.random.uniform(kt, (BATCH, SEQ_LEN), F32)
    t = jnp.cumsum(dt, axis=-1)

    ref = reference_forward(x, t)

    out = positional_encoding_forward(x, t)
    jax.block_until_ready(out)
    assert out.shape == (BATCH, SEQ_LEN, D_MODEL)

    np.testing.assert_allclose(np.asarray(out), np.asarray(ref),
                               rtol=1e-4, atol=1e-4)
    print("KERNEL_OK")
</pallas_src>

<mosaic_0001>
module attributes {stable_mosaic.version = 11 : i64} {
  func.func @_pe_kernel(%arg0: i32, %arg1: memref<16x128xf32, #tpu.memory_space<vmem>>, %arg2: memref<16x1xf32, #tpu.memory_space<vmem>>, %arg3: memref<16x128xf32, #tpu.memory_space<vmem>>) attributes {dimension_semantics = [#tpu.dimension_semantics<parallel>], iteration_bounds = array<i64: 1>, scalar_prefetch = 0 : i64, scratch_operands = 0 : i64, tpu.core_type = #tpu.core_type<tc>, window_params = [{transform_indices = @transform_0, window_bounds = array<i64: 16, 128>}, {transform_indices = @transform_1, window_bounds = array<i64: 16, 1>}, {transform_indices = @transform_2, window_bounds = array<i64: 16, 128>}]} {
    %0 = tpu.iota {dimensions = array<i32: 1>} : vector<1x128xi32>
    %c1_i32 = arith.constant 1 : i32
    %1 = vector.broadcast %c1_i32 : i32 to vector<1x128xi32>
    %2 = arith.shrsi %0, %1 : vector<1x128xi32>
    %c2_i32 = arith.constant 2 : i32
    %3 = vector.broadcast %c2_i32 : i32 to vector<1x128xi32>
    %4 = arith.muli %3, %2 : vector<1x128xi32>
    %5 = arith.sitofp %4 : vector<1x128xi32> to vector<1x128xf32>
    %cst = arith.constant -0.0719557852 : f32
    %6 = vector.broadcast %cst : f32 to vector<1x128xf32>
    %7 = arith.mulf %5, %6 : vector<1x128xf32>
    %8 = math.exp %7 : vector<1x128xf32>
    %c1_i32_0 = arith.constant 1 : i32
    %9 = vector.broadcast %c1_i32_0 : i32 to vector<1x128xi32>
    %10 = arith.andi %0, %9 : vector<1x128xi32>
    %11 = arith.sitofp %10 : vector<1x128xi32> to vector<1x128xf32>
    %cst_1 = arith.constant 1.57079637 : f32
    %12 = vector.broadcast %cst_1 : f32 to vector<1x128xf32>
    %13 = arith.mulf %11, %12 : vector<1x128xf32>
    %c0 = arith.constant 0 : index
    %c0_2 = arith.constant 0 : index
    %14 = vector.load %arg2[%c0, %c0_2] : memref<16x1xf32, #tpu.memory_space<vmem>>, vector<16x1xf32>
    %15 = vector.broadcast %14 : vector<16x1xf32> to vector<16x128xf32>
    %16 = vector.broadcast %8 : vector<1x128xf32> to vector<16x128xf32>
    %17 = arith.mulf %15, %16 : vector<16x128xf32>
    %18 = vector.broadcast %13 : vector<1x128xf32> to vector<16x128xf32>
    %19 = arith.addf %17, %18 : vector<16x128xf32>
    %20 = math.sin %19 : vector<16x128xf32>
    %c0_3 = arith.constant 0 : index
    %c0_4 = arith.constant 0 : index
    %21 = vector.load %arg1[%c0_3, %c0_4] : memref<16x128xf32, #tpu.memory_space<vmem>>, vector<16x128xf32>
    %22 = arith.addf %21, %20 : vector<16x128xf32>
    %c0_5 = arith.constant 0 : index
    %c0_6 = arith.constant 0 : index
    %23 = vector.load %arg3[%c0_5, %c0_6] : memref<16x128xf32, #tpu.memory_space<vmem>>, vector<16x128xf32>
    tpu.vector_store %arg3[%c0_5, %c0_6], %22 {strides = array<i32>} : memref<16x128xf32, #tpu.memory_space<vmem>>, vector<16x128xf32>,
    return
  }
  func.func @transform_0(%arg0: i32) -> (i32, i32) {
    %c0_i32 = arith.constant 0 : i32
    %c0_i32_0 = arith.constant 0 : i32
    return %arg0, %c0_i32 : i32, i32
  }
  func.func @transform_1(%arg0: i32) -> (i32, i32) {
    %c0_i32 = arith.constant 0 : i32
    %c0_i32_0 = arith.constant 0 : i32
    return %arg0, %c0_i32 : i32, i32
  }
  func.func @transform_2(%arg0: i32) -> (i32, i32) {
    %c0_i32 = arith.constant 0 : i32
    %c0_i32_0 = arith.constant 0 : i32
    return %arg0, %c0_i32 : i32, i32
  }
}

</mosaic_0001>

<bundles_post_ra>
// kernel: positional_encoding_forward.1
= control target key start
LH: loop header
LB: loop body
LE: loop exit
PB: predicated region body
PF: predicated region fallthrough
CT: control target
= control target key end

     0   :  { %v290_v0 = vmov 0   ;;  %v11_v3 = vlaneseq  ;;  %v291_v36 = vmov 683565275   ;;  %v292_v40 = vmov 2475754826   ;;  %s398_s1 = inlined_call_operand.vmem [shape: f32[16,1], index: 1, kind: input, shape index: {}]   ;;  %s399_s0 = inlined_call_operand.vmem [shape: f32[16,128], index: 0, kind: input, shape index: {}, may-alias: {0,2}]   ;;  %s400_s2 = inlined_call_operand.vmem [shape: f32[16,128], index: 2, kind: output, shape index: {}, may-alias: {0,2}]  }
   0x1   :  { %279 = vset.pattern.permute.xlu0 %v290_v0  ;;  %v22_v1 = vld [vmem:[%s398_s1] sm:$0xff]  ;;  %v23_v2 = vld [vmem:[%s398_s1 + $0x8] sm:$0xff]  ;;  %v293_v42 = vmov 2131351028   ;;  %v294_v44 = vmov 2102212464  }
   0x2   :  { %26 = vperm.xlu0 %279, %v22_v1   ;;  %v12_v4 = vand.u32 127, %v11_v3  ;;  %v295_v46 = vmov 920167782   ;;  %v296_v53 = vmov 1326507024  }
   0x4   :  { %v13_v5 = vshra.s32 %v12_v4, 1  ;;  %v19_v10 = vand.u32 1, %v12_v4 }
   0x6   :  { %31 = vperm.xlu0 %279, %v23_v2   ;;  %v14_v6 = vmul.u32 2, %v13_v5  ;;  %v20_v11 = vcvt.s32.f32 %v19_v10 }
   0x8   :  { %v15_v7 = vcvt.s32.f32 %v14_v6  ;;  %v21_v13 = vmul.f32 1.5707964, %v20_v11 }
   0xa   :  { %v16_v8 = vmul.f32 -0.071955785, %v15_v7 }
   0xc   :  { %v17_v9 = vmul.f32 1.442695, %v16_v8 }
   0xe   :  { %280 = vpow2.f32 %v17_v9 }
  0x18   :  { %v281_v12 = vpop.eup %280 }
  0x81   :  { %v27_v14 = vpop.permute.xlu0 %26 }
  0x82   :  { %v34_v15 = vmul.f32 %v281_v12, %v27_v14 }
  0x84   :  { %v318_v16 = vadd.f32 %v34_v15, %v21_v13 }
  0x85   :  { %v32_v17 = vpop.permute.xlu0 %31 }
  0x86   :  { %v38_v18 = vand.u32 2147483647, %v318_v16  ;;  %v41_v19 = vand.u32 2139095040, %v318_v16  ;;  %v35_v20 = vmul.f32 %v281_v12, %v32_v17  ;;  %vm40_vm14 = vcmp.lt.s32.totalorder %v318_v16, 0 }
  0x88   :  { %v42_v21 = vshrl.u32 %v41_v19, 23  ;;  %v45_v22 = vand.u32 8388607, %v38_v18  ;;  %v324_v23 = vadd.f32 %v35_v20, %v21_v13  ;;  %vm39_vm15 = vcmp.le.f32.partialorder %v38_v18, 0.7853982 }
  0x8a   :  { %v256_v24 = vadd.s32 4294967169, %v42_v21  ;;  %v145_v25 = vand.u32 2139095040, %v324_v23  ;;  %v46_v27 = vor.u32 8388608, %v45_v22  ;;  %v142_v29 = vand.u32 2147483647, %v324_v23 }
  0x8c   :  { %v48_v26 = vadd.s32 1, %v256_v24  ;;  %v146_v28 = vshrl.u32 %v145_v25, 23  ;;  %v328_v34 = vshll.u32 %v46_v27, 8  ;;  %v149_v38 = vand.u32 8388607, %v142_v29 }
  0x8e   :  { %vm49_vm0 = vcmp.gt.s32.totalorder %v48_v26, 0  ;;  %v260_v31 = vadd.s32 4294967169, %v146_v28  ;;  %v150_v4 = vor.u32 8388608, %v149_v38 }
  0x8f   :  { %v50_v30 = vsel %vm49_vm0, %v48_v26, 0  ;;  %vm144_vm0 = vcmp.lt.s32.totalorder %v324_v23, 0 }
  0x90   :  { %v51_v32 = vshrl.u32 %v50_v30, 5  ;;  %v52_v33 = vand.u32 31, %v50_v30  ;;  %v152_v39 = vadd.s32 1, %v260_v31  ;;  %v190_v19 = vshll.u32 %v150_v4, 8 }
  0x92   :  { %v53_v35 = vsub.s32 32, %v52_v33  ;;  %v55_v37 = vshll.u32 %v291_v36, %v52_v33  ;;  %v58_v41 = vshll.u32 %v292_v40, %v52_v33  ;;  %v61_v43 = vshll.u32 %v293_v42, %v52_v33 }
  0x93   :  { %v64_v45 = vshll.u32 %v294_v44, %v52_v33  ;;  %v67_v47 = vshll.u32 %v295_v46, %v52_v33  ;;  %vm70_vm1 = vcmp.lt.s32.totalorder %v51_v32, 1  ;;  %vm72_vm2 = vcmp.lt.s32.totalorder %v51_v32, 3 }
  0x94   :  { %v56_v48 = vshrl.u32 %v292_v40, %v53_v35  ;;  %v59_v49 = vshrl.u32 %v293_v42, %v53_v35  ;;  %v62_v50 = vshrl.u32 %v294_v44, %v53_v35  ;;  %v54_v51 = vshrl.u32 %v291_v36, %v53_v35 }
  0x95   :  { %v65_v52 = vshrl.u32 %v295_v46, %v53_v35  ;;  %v68_v54 = vshrl.u32 %v296_v53, %v53_v35  ;;  %vm153_vm3 = vcmp.gt.s32.totalorder %v152_v39, 0  ;;  %vm73_vm4 = vcmp.lt.s32.totalorder %v51_v32, 4 }
  0x96   :  { %v57_v55 = vor.u32 %v56_v48, %v55_v37  ;;  %v60_v56 = vor.u32 %v59_v49, %v58_v41  ;;  %v63_v57 = vor.u32 %v62_v50, %v61_v43  ;;  %v154_v60 = vsel %vm153_vm3, %v152_v39, 0 }
  0x97   :  { %v66_v58 = vor.u32 %v65_v52, %v64_v45  ;;  %v69_v59 = vor.u32 %v68_v54, %v67_v47  ;;  %vm71_vm5 = vcmp.lt.s32.totalorder %v51_v32, 2  ;;  %v156_v7 = vand.u32 31, %v154_v60 }
  0x98   :  { %v74_v61 = vsel %vm70_vm1, %v54_v51, %v57_v55  ;;  %v75_v62 = vsel %vm73_vm4, %v63_v57, 2102212464  ;;  %v78_v63 = vsel %vm70_vm1, %v57_v55, %v60_v56  ;;  %v82_v0 = vsel %vm70_vm1, %v60_v56, %v63_v57 }
  0x99   :  { %v76_v1 = vsel %vm72_vm2, %v60_v56, %v75_v62  ;;  %v79_v2 = vsel %vm73_vm4, %v66_v58, 920167782  ;;  %v83_v3 = vsel %vm73_vm4, %v69_v59, 1326507024  ;;  %v155_v15 = vshrl.u32 %v154_v60, 5 }
  0x9a   :  { %v80_v5 = vsel %vm72_vm2, %v63_v57, %v79_v2  ;;  %v84_v6 = vsel %vm72_vm2, %v66_v58, %v83_v3  ;;  %v77_v8 = vsel %vm71_vm5, %v74_v61, %v76_v1  ;;  %v157_v17 = vsub.s32 32, %v156_v7 }
  0x9b   :  { %v81_v9 = vsel %vm71_vm5, %v78_v63, %v80_v5  ;;  %v85_v10 = vsel %vm71_vm5, %v82_v0, %v84_v6  ;;  %v93_v20 = vmul.u32 %v328_v34, %v77_v8  ;;  %v159_v21 = vshll.u32 %v291_v36, %v156_v7 }
  0x9c   :  { %v341_v11 = vmul.u32.u64.low %v328_v34, %v85_v10  ;;  %v342_v12 = vmul.u32.u64.high %v328_v34, %v85_v10, %v341_v11  ;;  %v345_v13 = vmul.u32.u64.low %v328_v34, %v81_v9  ;;  %v346_v14 = vmul.u32.u64.high %v328_v34, %v81_v9, %v345_v13 }
  0x9d   :  { %v162_v22 = vshll.u32 %v292_v40, %v156_v7  ;;  %v165_v24 = vshll.u32 %v293_v42, %v156_v7  ;;  %v160_v25 = vshrl.u32 %v292_v40, %v157_v17  ;;  %v163_v26 = vshrl.u32 %v293_v42, %v157_v17 }
  0x9e   :  { %v166_v27 = vshrl.u32 %v294_v44, %v157_v17  ;;  %v168_v28 = vshll.u32 %v294_v44, %v156_v7  ;;  %vm95_vm6 = vc.u32 %v342_v12, %v345_v13  ;;  %v96_v30 = vadd.s32 1, %v346_v14 }
  0x9f   :  { %v169_v31 = vshrl.u32 %v295_v46, %v157_v17  ;;  %v171_v32 = vshll.u32 %v295_v46, %v156_v7  ;;  %v161_v33 = vor.u32 %v160_v25, %v159_v21  ;;  %v164_v35 = vor.u32 %v163_v26, %v162_v22 }
  0xa0   :  { %v167_v37 = vor.u32 %v166_v27, %v165_v24  ;;  %v172_v38 = vshrl.u32 %v296_v53, %v157_v17  ;;  %v97_v34 = vsel %vm95_vm6, %v96_v30, %v346_v14  ;;  %vm174_vm7 = vcmp.lt.s32.totalorder %v155_v15, 1 }
  0xa1   :  { %v170_v39 = vor.u32 %v169_v31, %v168_v28  ;;  %vm177_vm8 = vcmp.lt.s32.totalorder %v155_v15, 4  ;;  %v98_v40 = vadd.s32 %v97_v34, %v93_v20  ;;  %vm176_vm9 = vcmp.lt.s32.totalorder %v155_v15, 3 }
  0xa2   :  { %v173_v41 = vor.u32 %v172_v38, %v171_v32  ;;  %v179_v42 = vsel %vm177_vm8, %v167_v37, 2102212464  ;;  %v158_v43 = vshrl.u32 %v291_v36, %v157_v17  ;;  %v182_v44 = vsel %vm174_vm7, %v161_v33, %v164_v35 }
  0xa3   :  { %v183_v45 = vsel %vm177_vm8, %v170_v39, 920167782  ;;  %v186_v47 = vsel %vm174_vm7, %v164_v35, %v167_v37  ;;  %v99_v48 = vadd.s32 536870912, %v98_v40  ;;  %vm175_vm10 = vcmp.lt.s32.totalorder %v155_v15, 2 }
  0xa4   :  { %v184_v46 = vsel %vm176_vm9, %v167_v37, %v183_v45  ;;  %v187_v49 = vsel %vm177_vm8, %v173_v41, 1326507024  ;;  %v178_v50 = vsel %vm174_vm7, %v158_v43, %v161_v33  ;;  %v180_v51 = vsel %vm176_vm9, %v164_v35, %v179_v42 }
  0xa5   :  { %v185_v52 = vsel %vm175_vm10, %v182_v44, %v184_v46  ;;  %v188_v53 = vsel %vm176_vm9, %v170_v39, %v187_v49  ;;  %v100_v54 = vshrl.u32 %v99_v48, 30  ;;  %v181_v60 = vsel %vm175_vm10, %v178_v50, %v180_v51 }
  0xa6   :  { %v189_v55 = vsel %vm175_vm10, %v186_v47, %v188_v53  ;;  %v356_v56 = vmul.u32.u64.low %v190_v19, %v185_v52  ;;  %v357_v57 = vmul.u32.u64.high %v190_v19, %v185_v52, %v356_v56  ;;  %v197_v63 = vmul.u32 %v190_v19, %v181_v60 }
  0xa7   :  { %v359_v58 = vmul.u32.u64.low %v190_v19, %v189_v55  ;;  %v360_v59 = vmul.u32.u64.high %v190_v19, %v189_v55, %v359_v58  ;;  %v101_v36 = vshll.u32 %v100_v54, 30  ;;  %v94_v11 = vadd.s32 %v345_v13, %v342_v12 }
  0xa8   :  { %v200_v62 = vadd.s32 1, %v357_v57  ;;  %v124_v33 = vsub.s32 4, %v100_v54  ;;  %vm375_vm1 = vcmp.le.f32.partialorder %v142_v29, 0.7853982  ;;  %vm130_vm5 = vweird.f32 %v318_v16 }
  0xa9   :  { %v102_v61 = vsub.s32 %v98_v40, %v101_v36  ;;  %vm199_vm11 = vc.u32 %v360_v59, %v356_v56  ;;  %v198_v12 = vadd.s32 %v356_v56, %v360_v59  ;;  %vm234_vm9 = vweird.f32 %v324_v23 }
  0xaa   :  { %v201_v1 = vsel %vm199_vm11, %v200_v62, %v357_v57  ;;  %v125_v42 = vsel %vm40_vm14, %v124_v33, %v100_v54 }
  0xab   :  { %v104_v0 = vsub.s32 0, %v102_v61  ;;  %v202_v2 = vadd.s32 %v201_v1, %v197_v63  ;;  %v127_v47 = vsel %vm39_vm15, 0, %v125_v42  ;;  %v246_v63 = vld [vmem:[%s399_s0] sm:$0xff] }
  0xac   :  { %v131_v50 = vadd.s32 3, %v127_v47 }
  0xad   :  { %v257_v3 = vmin.u32 %v104_v0, %v102_v61  ;;  %v203_v4 = vadd.s32 536870912, %v202_v2 }
  0xae   :  { %v132_v55 = vand.u32 3, %v131_v50 }
  0xaf   :  { %v106_v5 = vclz %v257_v3  ;;  %v204_v6 = vshrl.u32 %v203_v4, 30 }
  0xb0   :  { %vm137_vm2 = vcmp.eq.s32.totalorder %v132_v55, 2  ;;  %vm134_vm3 = vcmp.eq.s32.totalorder %v132_v55, 0  ;;  %vm133_vm4 = vcmp.lt.s32.totalorder %v132_v55, 2 }
  0xb1   :  { %v258_v7 = vadd.s32 4294967294, %v106_v5  ;;  %v205_v8 = vshll.u32 %v204_v6, 30  ;;  %v228_v52 = vsub.s32 4, %v204_v6 }
  0xb3   :  { %vm259_vm12 = vcmp.lt.s32.totalorder %v258_v7, 0  ;;  %v206_v10 = vsub.s32 %v202_v2, %v205_v8  ;;  %v229_v56 = vsel %vm144_vm0, %v228_v52, %v204_v6 }
  0xb4   :  { %v109_v9 = vsel %vm259_vm12, 0, %v258_v7 }
  0xb5   :  { %v110_v14 = vsub.s32 32, %v109_v9  ;;  %v114_v15 = vsub.s32 4294967266, %v109_v9  ;;  %v208_v17 = vsub.s32 0, %v206_v10  ;;  %v111_v19 = vshll.u32 %v102_v61, %v109_v9 }
  0xb6   :  { %v231_v61 = vsel %vm375_vm1, 0, %v229_v56 }
  0xb7   :  { %v112_v20 = vshrl.u32 %v94_v11, %v110_v14  ;;  %v115_v21 = vadd.s32 127, %v114_v15  ;;  %v261_v22 = vmin.u32 %v208_v17, %v206_v10  ;;  %v235_v1 = vadd.s32 3, %v231_v61 }
  0xb9   :  { %v113_v24 = vor.u32 %v112_v20, %v111_v19  ;;  %v116_v25 = vshll.u32 %v115_v21, 23  ;;  %v210_v26 = vclz %v261_v22  ;;  %v236_v4 = vand.u32 3, %v235_v1 }
  0xbb   :  { %v117_v27 = vor.u32 4788187, %v116_v25  ;;  %v262_v28 = vadd.s32 4294967294, %v210_v26  ;;  %v120_v31 = vcvt.s32.f32 %v113_v24  ;;  %vm241_vm6 = vcmp.eq.s32.totalorder %v236_v4, 2 }
  0xbc   :  { %vm238_vm7 = vcmp.eq.s32.totalorder %v236_v4, 0  ;;  %vm237_vm8 = vcmp.lt.s32.totalorder %v236_v4, 2 }
  0xbd   :  { %v118_v30 = vand.u32 2147483647, %v117_v27  ;;  %vm263_vm13 = vcmp.lt.s32.totalorder %v262_v28, 0 }
  0xbe   :  { %v213_v35 = vsel %vm263_vm13, 0, %v262_v28 }
  0xbf   :  { %v121_v32 = vmul.f32 %v120_v31, %v118_v30  ;;  %v214_v13 = vsub.s32 32, %v213_v35  ;;  %v218_v37 = vsub.s32 4294967266, %v213_v35  ;;  %v215_v34 = vshll.u32 %v206_v10, %v213_v35 }
  0xc1   :  { %v122_v38 = vxor.u32 2147483648, %v121_v32  ;;  %v216_v39 = vshrl.u32 %v198_v12, %v214_v13  ;;  %v219_v40 = vadd.s32 127, %v218_v37 }
  0xc3   :  { %v123_v41 = vsel %vm40_vm14, %v122_v38, %v121_v32  ;;  %v217_v44 = vor.u32 %v216_v39, %v215_v34  ;;  %v220_v45 = vshll.u32 %v219_v40, 23 }
  0xc4   :  { %v126_v43 = vsel %vm39_vm15, %v318_v16, %v123_v41 }
  0xc5   :  { %282 = vcosq.f32 %v126_v43  ;;  %v221_v48 = vor.u32 4788187, %v220_v45  ;;  %v224_v49 = vcvt.s32.f32 %v217_v44 }
  0xc6   :  { %284 = vsinq.f32 %v126_v43 }
  0xc7   :  { %v222_v46 = vand.u32 2147483647, %v221_v48 }
  0xc9   :  { %v225_v51 = vmul.f32 %v224_v49, %v222_v46 }
  0xcb   :  { %v226_v53 = vxor.u32 2147483648, %v225_v51 }
  0xcd   :  { %v227_v54 = vsel %vm144_vm0, %v226_v53, %v225_v51 }
  0xce   :  { %v230_v58 = vsel %vm375_vm1, %v324_v23, %v227_v54 }
  0xcf   :  { %v283_v57 = vpop.eup %282  ;;  %286 = vcosq.f32 %v230_v58 }
  0xd0   :  { %v285_v59 = vpop.eup %284  ;;  %v138_v36 = vxor.u32 2147483648, %v283_v57  ;;  %288 = vsinq.f32 %v230_v58 }
  0xd1   :  { %v135_v60 = vxor.u32 2147483648, %v285_v59 }
  0xd2   :  { %v139_v29 = vsel %vm137_vm2, %v138_v36, %v285_v59 }
  0xd3   :  { %v136_v62 = vsel %vm134_vm3, %v283_v57, %v135_v60 }
  0xd4   :  { %v140_v0 = vsel %vm133_vm4, %v136_v62, %v139_v29 }
  0xd5   :  { %v141_v2 = vsel %vm130_vm5, nan, %v140_v0 }
  0xd6   :  { %v248_v3 = vadd.f32 %v246_v63, %v141_v2 }
  0xd8   :  { %250 = vst [vmem:[%s400_s2] sm:$0xff] %v248_v3 }
  0xd9   :  { %v287_v5 = vpop.eup %286 }
  0xda   :  { %v289_v6 = vpop.eup %288  ;;  %v242_v7 = vxor.u32 2147483648, %v287_v5 }
  0xdb   :  { %v239_v8 = vxor.u32 2147483648, %v289_v6 }
  0xdc   :  { %v243_v9 = vsel %vm241_vm6, %v242_v7, %v289_v6 }
  0xdd   :  { %v240_v10 = vsel %vm238_vm7, %v287_v5, %v239_v8 }
  0xde   :  { %v244_v11 = vsel %vm237_vm8, %v240_v10, %v243_v9 }
  0xdf   :  { %v247_v16 = vld [vmem:[%s399_s0 + $0x8] sm:$0xff]  ;;  %v245_v14 = vsel %vm234_vm9, nan, %v244_v11 }
  0xe0   :  { %v249_v15 = vadd.f32 %v247_v16, %v245_v14 }
  0xe2   :  { %251 = vst [vmem:[%s400_s2 + $0x8] sm:$0xff] %v249_v15 }

</bundles_post_ra>
